<compile_context>
chip_gen: v7x
topology: tpu7x:2x2x1
jax: 0.10.0
libtpu: 0.0.40
codegen_flags: <defaults>
</compile_context>

<pallas_src>
import functools
import math

import jax
import jax.numpy as jnp
from jax.experimental import pallas as pl
from jax.experimental.pallas import tpu as pltpu

LEAKY_SLOPE = 0.3
BN_EPS = 1e-5
VMEM_BUDGET = 24 * 1024 * 1024      # per-call working-set target
VMEM_LIMIT = 32 * 1024 * 1024       # raise v5e's 16 MiB scoped default


def _cdiv(a, b):
    return (a + b - 1) // b


def _round_up(a, b):
    return _cdiv(a, b) * b


def _pick_tm(m):
    if m <= 256:
        return m                                    # full extent (always legal)
    if m <= 1024:
        return _round_up(_cdiv(m, 2), 8)            # >= 2 tiles (v7x: 2 TCs)
    return 512


# ----------------------------------------------------------------------------
# Fused matmul kernels: out = act(A @ W + shift [+ residual])
# A, W are bf16 on the MXU; accumulation / affine / activation in f32.
# Single-pass (weight fully resident, 1-D grid) or K-tiled fallback.
# ----------------------------------------------------------------------------
def _mm_single_kernel(a_ref, w_ref, b_ref, o_ref, *, slope):
    y = jnp.dot(a_ref[...], w_ref[...], preferred_element_type=jnp.float32)
    y = y + b_ref[...]
    if slope is not None:
        y = jnp.where(y >= 0, y, slope * y)
    o_ref[...] = y.astype(o_ref.dtype)


def _mm_single_res_kernel(a_ref, w_ref, b_ref, r_ref, o_ref, *, slope):
    y = jnp.dot(a_ref[...], w_ref[...], preferred_element_type=jnp.float32)
    y = y + b_ref[...] + r_ref[...].astype(jnp.float32)
    if slope is not None:
        y = jnp.where(y >= 0, y, slope * y)
    o_ref[...] = y.astype(o_ref.dtype)


def _mm_tiled_kernel(a_ref, w_ref, b_ref, o_ref, acc_ref, *, slope):
    k = pl.program_id(2)
    p = jnp.dot(a_ref[...], w_ref[...], preferred_element_type=jnp.float32)

    @pl.when(k == 0)
    def _():
        acc_ref[...] = p

    @pl.when(k > 0)
    def _():
        acc_ref[...] += p

    @pl.when(k == pl.num_programs(2) - 1)
    def _():
        y = acc_ref[...] + b_ref[...]
        if slope is not None:
            y = jnp.where(y >= 0, y, slope * y)
        o_ref[...] = y.astype(o_ref.dtype)


def _mm_tiled_res_kernel(a_ref, w_ref, b_ref, r_ref, o_ref, acc_ref, *, slope):
    k = pl.program_id(2)
    p = jnp.dot(a_ref[...], w_ref[...], preferred_element_type=jnp.float32)

    @pl.when(k == 0)
    def _():
        acc_ref[...] = p

    @pl.when(k > 0)
    def _():
        acc_ref[...] += p

    @pl.when(k == pl.num_programs(2) - 1)
    def _():
        y = acc_ref[...] + b_ref[...] + r_ref[...].astype(jnp.float32)
        if slope is not None:
            y = jnp.where(y >= 0, y, slope * y)
        o_ref[...] = y.astype(o_ref.dtype)


def matmul_bias_act(a, wmat, shift, *, slope=None, residual=None,
                    out_dtype=jnp.bfloat16):
    M, K = a.shape
    N = wmat.shape[1]
    Np = _round_up(N, 128)                          # lane-dense stores
    a = a.astype(jnp.bfloat16)
    w = jnp.pad(wmat, ((0, 0), (0, Np - N))).astype(jnp.bfloat16)
    b = jnp.pad(shift.reshape(1, N), ((0, 0), (0, Np - N))).astype(jnp.float32)
    r = None
    if residual is not None:
        r = jnp.pad(residual.reshape(M, N),
                    ((0, 0), (0, Np - N))).astype(jnp.bfloat16)

    tm = _pick_tm(M)
    mt = _cdiv(M, tm)

    def est_single(tm_):
        e = 2 * 2 * (tm_ * K + tm_ * Np) + 2 * K * Np
        if r is not None:
            e += 2 * 2 * tm_ * Np
        return e

    if est_single(tm) <= VMEM_BUDGET:
        # Weight fully VMEM-resident: single K pass, no accumulator, 1-D grid.
        in_specs = [pl.BlockSpec((tm, K), lambda i: (i, 0)),
                    pl.BlockSpec((K, Np), lambda i: (0, 0)),
                    pl.BlockSpec((1, Np), lambda i: (0, 0))]
        args = [a, w, b]
        if r is None:
            kernel = functools.partial(_mm_single_kernel, slope=slope)
        else:
            in_specs.append(pl.BlockSpec((tm, Np), lambda i: (i, 0)))
            args.append(r)
            kernel = functools.partial(_mm_single_res_kernel, slope=slope)
        out = pl.pallas_call(
            kernel,
            out_shape=jax.ShapeDtypeStruct((M, Np), out_dtype),
            grid=(mt,),
            in_specs=in_specs,
            out_specs=pl.BlockSpec((tm, Np), lambda i: (i, 0)),
            compiler_params=pltpu.CompilerParams(
                dimension_semantics=("parallel",),
                vmem_limit_bytes=VMEM_LIMIT),
        )(*args)
    else:
        # K-tiled fallback with an f32 VMEM accumulator, K innermost.
        tn = Np if Np <= 512 else 512
        tk = K
        for cand in (2048, 1024, 512, 384, 256, 128):
            if K % cand == 0:
                tk = cand
                break
        grid = (mt, Np // tn, K // tk)
        in_specs = [pl.BlockSpec((tm, tk), lambda i, j, k: (i, k)),
                    pl.BlockSpec((tk, tn), lambda i, j, k: (k, j)),
                    pl.BlockSpec((1, tn), lambda i, j, k: (0, j))]
        args = [a, w, b]
        if r is None:
            kernel = functools.partial(_mm_tiled_kernel, slope=slope)
        else:
            in_specs.append(pl.BlockSpec((tm, tn), lambda i, j, k: (i, j)))
            args.append(r)
            kernel = functools.partial(_mm_tiled_res_kernel, slope=slope)
        out = pl.pallas_call(
            kernel,
            out_shape=jax.ShapeDtypeStruct((M, Np), out_dtype),
            grid=grid,
            in_specs=in_specs,
            out_specs=pl.BlockSpec((tm, tn), lambda i, j, k: (i, j)),
            scratch_shapes=[pltpu.VMEM((tm, tn), jnp.float32)],
            compiler_params=pltpu.CompilerParams(
                dimension_semantics=("parallel", "parallel", "arbitrary"),
                vmem_limit_bytes=VMEM_LIMIT),
        )(*args)
    return out if Np == N else out[:, :N]


# ----------------------------------------------------------------------------
# Direct stride-1 VALID conv "tap" kernel: no HBM im2col.
# The padded activation is flattened to (B*HP*WPp, Cin); tap (kh, kw) is a row
# shift of kh*WPp + kw.  Each grid step stages its rows + halo in bf16 VMEM,
# builds a (tm, KH*KW*Cin) im2col block in VMEM and runs ONE matmul.
# ----------------------------------------------------------------------------
def _tap_conv_kernel(body_ref, halo_ref, w_ref, b_ref, o_ref, xbuf_ref,
                     col_ref, *, offs, tm, cin, slope):
    xbuf_ref[0:tm, :] = body_ref[...]
    xbuf_ref[tm:, :] = halo_ref[...]
    for t, d in enumerate(offs):                     # static taps, unrolled
        col_ref[:, t * cin:(t + 1) * cin] = xbuf_ref[d:d + tm, :]
    y = jnp.dot(col_ref[...], w_ref[...], preferred_element_type=jnp.float32)
    y = y + b_ref[...]
    if slope is not None:
        y = jnp.where(y >= 0, y, slope * y)
    o_ref[...] = y.astype(o_ref.dtype)


def _tap_vmem_est(tm, halo, cin, K, Np):
    return (2 * 2 * (tm * cin + halo * cin + tm * Np)   # dbl-buffered streams
            + 2 * K * Np                                # resident weight
            + 2 * ((tm + halo) * cin + tm * K))         # bf16 scratch


def conv2d_tap(x, w, shift, *, slope, out_h, out_w):
    """Stride-1 VALID conv on an already-padded NHWC input; crops the result."""
    B, HP, WP, Cin = x.shape
    Cout, _, KH, KW = w.shape
    x = x.astype(jnp.bfloat16)

    WPp = _round_up(WP, 8)               # keep kh*WPp tap offsets 8-aligned
    if WPp != WP:
        x = jnp.pad(x, ((0, 0), (0, 0), (0, WPp - WP), (0, 0)))

    Np = _round_up(Cout, 128)            # lane-dense stores
    K = KH * KW * Cin
    wmat = jnp.transpose(w, (2, 3, 1, 0)).reshape(K, Cout)
    wmat = jnp.pad(wmat, ((0, 0), (0, Np - Cout))).astype(jnp.bfloat16)
    bias = jnp.pad(shift.reshape(1, Cout),
                   ((0, 0), (0, Np - Cout))).astype(jnp.float32)

    rows = B * HP * WPp
    d_max = (KH - 1) * WPp + (KW - 1)
    halo = _round_up(max(d_max, 8), 8)
    q = max(1, min(max(1, 512 // halo), _cdiv(rows, halo)))
    while q > 1 and _tap_vmem_est(q * halo, halo, Cin, K, Np) > VMEM_BUDGET:
        q -= 1
    # TODO(synk): for very long audio on v7x, tile along H with a fixed W halo
    #             instead of letting the row tile track the padded width.
    tm = q * halo
    mt = _cdiv(rows, tm)

    xf = x.reshape(rows, Cin)
    xf = jnp.pad(xf, ((0, mt * tm + halo - rows), (0, 0)))   # explicit zeros
    offs = tuple(kh * WPp + kw for kh in range(KH) for kw in range(KW))

    out = pl.pallas_call(
        functools.partial(_tap_conv_kernel, offs=offs, tm=tm, cin=Cin,
                          slope=slope),
        out_shape=jax.ShapeDtypeStruct((mt * tm, Np), jnp.bfloat16),
        grid=(mt,),
        in_specs=[
            pl.BlockSpec((tm, Cin), lambda i: (i, 0)),                  # body
            pl.BlockSpec((halo, Cin), lambda i, q=q: (i * q + q, 0)),   # halo only
            pl.BlockSpec((K, Np), lambda i: (0, 0)),                    # weight
            pl.BlockSpec((1, Np), lambda i: (0, 0)),                    # shift
        ],
        out_specs=pl.BlockSpec((tm, Np), lambda i: (i, 0)),
        scratch_shapes=[pltpu.VMEM((tm + halo, Cin), jnp.bfloat16),
                        pltpu.VMEM((tm, K), jnp.bfloat16)],
        compiler_params=pltpu.CompilerParams(
            dimension_semantics=("parallel",),
            vmem_limit_bytes=VMEM_LIMIT),
    )(xf, xf, wmat, bias)

    out = out[:rows, :Cout].reshape(B, HP, WPp, Cout)
    return out[:, :out_h, :out_w, :]


def conv2d_same(x, w, shift, *, slope=None):
    """Stride-1 'same' conv (3x3 conv0 of every ResNet block) via tap kernel."""
    B, H, W, _ = x.shape
    _, _, KH, KW = w.shape
    xp = jnp.pad(x, ((0, 0), (KH // 2, KH - 1 - KH // 2),
                     (KW // 2, KW - 1 - KW // 2), (0, 0)))
    return conv2d_tap(xp, w, shift, slope=slope, out_h=H, out_w=W)


# ----------------------------------------------------------------------------
# Strided conv via space-to-depth: fold the stride into channels (one layout
# transpose, ~1x activation traffic), then the same stride-1 tap kernel.
# ----------------------------------------------------------------------------
def _space_to_depth_h(x, w, factor):
    if factor == 1:
        return x, w
    B, H, W, C = x.shape
    Co, _, KH, KW = w.shape
    Hq = _cdiv(H, factor)
    x = jnp.pad(x, ((0, 0), (0, Hq * factor - H), (0, 0), (0, 0)))
    x = x.reshape(B, Hq, factor, W, C).transpose(0, 1, 3, 2, 4)
    x = x.reshape(B, Hq, W, factor * C)
    KHq = _cdiv(KH, factor)
    w = jnp.pad(w, ((0, 0), (0, 0), (0, KHq * factor - KH), (0, 0)))
    w = w.reshape(Co, C, KHq, factor, KW).transpose(0, 3, 1, 2, 4)
    w = w.reshape(Co, factor * C, KHq, KW)
    return x, w


def _space_to_depth_w(x, w, factor):
    if factor == 1:
        return x, w
    B, H, W, C = x.shape
    Co, _, KH, KW = w.shape
    Wq = _cdiv(W, factor)
    x = jnp.pad(x, ((0, 0), (0, 0), (0, Wq * factor - W), (0, 0)))
    x = x.reshape(B, H, Wq, factor * C)              # pure reshape, no copy
    KWq = _cdiv(KW, factor)
    w = jnp.pad(w, ((0, 0), (0, 0), (0, 0), (0, KWq * factor - KW)))
    w = w.reshape(Co, C, KH, KWq, factor).transpose(0, 4, 1, 2, 3)
    w = w.reshape(Co, factor * C, KH, KWq)
    return x, w


def conv2d_strided(x, w, shift, stride, *, slope=None):
    """VALID strided conv on an already (reflection-)padded NHWC input."""
    sh, sw = stride
    B, H, W, _ = x.shape
    _, _, KH, KW = w.shape
    out_h = (H - KH) // sh + 1
    out_w = (W - KW) // sw + 1
    xf, wf = _space_to_depth_h(x, w, sh)
    xf, wf = _space_to_depth_w(xf, wf, sw)
    return conv2d_tap(xf, wf, shift, slope=slope, out_h=out_h, out_w=out_w)


def conv2d_same_im2col(x, w, shift, *, slope=None):
    """Stride-1 'same' conv via im2col + matmul (only for the Cin=1 conv_in)."""
    B, H, W, Cin = x.shape
    Cout, _, KH, KW = w.shape
    xp = jnp.pad(x, ((0, 0), (KH // 2, KH - 1 - KH // 2),
                     (KW // 2, KW - 1 - KW // 2), (0, 0)))
    cols = [xp[:, kh:kh + H, kw:kw + W, :]
            for kh in range(KH) for kw in range(KW)]
    patches = jnp.concatenate(cols, axis=-1).reshape(B * H * W, KH * KW * Cin)
    wmat = jnp.transpose(w, (2, 3, 1, 0)).reshape(KH * KW * Cin, Cout)
    out = matmul_bias_act(patches, wmat, shift, slope=slope)
    return out.reshape(B, H, W, Cout)


def bn_fold(bias, gamma, beta, mean, var):
    """Fold conv bias + eval-mode BatchNorm into per-channel (scale, shift)."""
    s = gamma / jnp.sqrt(var + BN_EPS)
    t = beta - mean * s + bias * s
    return s, t


def fold_scale(w, scale):
    return w * scale[:, None, None, None]


# ----------------------------------------------------------------------------
# STFT magnitude (torch.stft normalized=True, onesided=True, center=True):
# one gather for framing, one fused [cos|sin] DFT matmul + |.| kernel (f32).
# ----------------------------------------------------------------------------
def _stft_kernel(f_ref, basis_ref, o_ref, *, fp):
    z = jnp.dot(f_ref[...], basis_ref[...], preferred_element_type=jnp.float32)
    re = z[:, :fp]
    im = z[:, fp:]
    o_ref[...] = jnp.sqrt(re * re + im * im).astype(o_ref.dtype)


def stft_magnitude(x, n_fft, hop_length):
    B, L = x.shape
    pad = n_fft // 2
    xp = jnp.pad(x, ((0, 0), (pad, pad)), mode="reflect")
    T = 1 + L // hop_length
    idx = jnp.arange(T)[:, None] * hop_length + jnp.arange(n_fft)[None, :]
    frames = xp[:, idx].reshape(B * T, n_fft).astype(jnp.float32)

    F = n_fft // 2 + 1
    Fp = _round_up(F, 128)
    n = jnp.arange(n_fft, dtype=jnp.float32)[:, None]
    k = jnp.arange(F, dtype=jnp.float32)[None, :]
    ang = -2.0 * jnp.pi * n * k / n_fft
    scale = 1.0 / math.sqrt(n_fft)                  # normalized=True
    cos_m = jnp.pad(jnp.cos(ang) * scale, ((0, 0), (0, Fp - F)))
    sin_m = jnp.pad(jnp.sin(ang) * scale, ((0, 0), (0, Fp - F)))
    basis = jnp.concatenate([cos_m, sin_m], axis=1)  # (n_fft, 2*Fp) f32

    M = B * T
    tm = _pick_tm(M)
    mt = _cdiv(M, tm)
    mag = pl.pallas_call(
        functools.partial(_stft_kernel, fp=Fp),
        out_shape=jax.ShapeDtypeStruct((M, Fp), jnp.bfloat16),
        grid=(mt,),
        in_specs=[pl.BlockSpec((tm, n_fft), lambda i: (i, 0)),
                  pl.BlockSpec((n_fft, 2 * Fp), lambda i: (0, 0))],
        out_specs=pl.BlockSpec((tm, Fp), lambda i: (i, 0)),
        compiler_params=pltpu.CompilerParams(
            dimension_semantics=("parallel",),
            vmem_limit_bytes=VMEM_LIMIT),
    )(frames, basis)
    return mag[:, :F].reshape(B, T, F).transpose(0, 2, 1)   # (B, F, T)


# ----------------------------------------------------------------------------
# Parameter initialization (deterministic, PyTorch-default-like)
# ----------------------------------------------------------------------------
def init_conv(key, cout, cin, kh, kw):
    kw_, kb_ = jax.random.split(key)
    bound = 1.0 / math.sqrt(cin * kh * kw)
    w = jax.random.uniform(kw_, (cout, cin, kh, kw), jnp.float32, -bound, bound)
    b = jax.random.uniform(kb_, (cout,), jnp.float32, -bound, bound)
    return {"w": w, "b": b}


def init_bn(c):
    return {"gamma": jnp.ones((c,), jnp.float32),
            "beta": jnp.zeros((c,), jnp.float32),
            "mean": jnp.zeros((c,), jnp.float32),
            "var": jnp.ones((c,), jnp.float32)}


def init_resnet(key, n_channels, factor, stride):
    k0, k1, k2 = jax.random.split(key, 3)
    return {
        "conv0": init_conv(k0, n_channels, n_channels, 3, 3),
        "bn0": init_bn(n_channels),
        "conv1": init_conv(k1, factor * n_channels, n_channels,
                           stride[0] + 2, stride[1] + 2),
        "bn1": init_bn(factor * n_channels),
        "conv2": init_conv(k2, factor * n_channels, n_channels, 1, 1),
        "bn2": init_bn(factor * n_channels),
        "stride": stride,
    }


# ----------------------------------------------------------------------------
# ResNet2d block
# ----------------------------------------------------------------------------
def resnet2d(x, p):
    sh, sw = p["stride"]
    # conv0 3x3 'same' + BN0 + LeakyReLU  (direct tap kernel, no im2col)
    s0, t0 = bn_fold(p["conv0"]["b"], **p["bn0"])
    h = conv2d_same(x, fold_scale(p["conv0"]["w"], s0), t0, slope=LEAKY_SLOPE)
    # ReflectionPad2d + conv1 + BN1 (no activation yet) — space-to-depth fold
    pad_l, pad_r = (sw + 1) // 2, (sw + 2) // 2
    pad_t, pad_b = (sh + 1) // 2, (sh + 2) // 2
    h = jnp.pad(h, ((0, 0), (pad_t, pad_b), (pad_l, pad_r), (0, 0)),
                mode="reflect")
    s1, t1 = bn_fold(p["conv1"]["b"], **p["bn1"])
    h = conv2d_strided(h, fold_scale(p["conv1"]["w"], s1), t1, (sh, sw),
                       slope=None)
    # conv2 (1x1, stride) + BN2 + residual add + LeakyReLU — fused in kernel
    s2, t2 = bn_fold(p["conv2"]["b"], **p["bn2"])
    w2 = fold_scale(p["conv2"]["w"], s2)
    xs = x[:, ::sh, ::sw, :]
    B, Ho, Wo, Cin = xs.shape
    Cout = w2.shape[0]
    out = matmul_bias_act(xs.reshape(B * Ho * Wo, Cin),
                          w2.reshape(Cout, Cin).T, t2,
                          slope=LEAKY_SLOPE,
                          residual=h.reshape(B * Ho * Wo, Cout))
    return out.reshape(B, Ho, Wo, Cout)


# ----------------------------------------------------------------------------
# STFTDiscriminator
# ----------------------------------------------------------------------------
class STFTDiscriminator:
    def __init__(self, key, n_fft=1024, hop_length=256, n_channels=32):
        self.n_fft = n_fft
        self.hop_length = hop_length
        n = n_fft // 2 + 1
        for _ in range(6):
            n = (n - 1) // 2 + 1
        keys = jax.random.split(key, 8)
        nc = n_channels
        self.conv_in = init_conv(keys[0], nc, 1, 7, 7)
        specs = [(nc, 2, (2, 1)), (2 * nc, 2, (2, 2)), (4 * nc, 1, (2, 1)),
                 (4 * nc, 2, (2, 2)), (8 * nc, 1, (2, 1)), (8 * nc, 2, (2, 2))]
        self.blocks = [init_resnet(keys[i + 1], c, f, s)
                       for i, (c, f, s) in enumerate(specs)]
        self.conv_out = init_conv(keys[7], 1, 16 * nc, n, 1)

    def _apply_conv_out(self, h):
        # final conv: kernel (n, 1), no BN, no activation (Hout collapses to 1)
        B, Hh, Wh, C = h.shape
        patches = jnp.transpose(h, (0, 2, 1, 3)).reshape(B * Wh, Hh * C)
        wmat = jnp.transpose(self.conv_out["w"], (2, 3, 1, 0)).reshape(Hh * C, 1)
        out = matmul_bias_act(patches, wmat, self.conv_out["b"],
                              slope=None, out_dtype=jnp.float32)
        return out.reshape(B, 1, Wh, 1)

    def __call__(self, x):
        # x: (B, 1, L) — same as the PyTorch module input
        assert x.shape[1] == 1
        x = x[:, 0, :].astype(jnp.float32)
        mag = stft_magnitude(x, self.n_fft, self.hop_length)   # (B, F, T) bf16
        h = mag[..., None]                                     # NHWC, C=1
        # first conv: 7x7 'same' + LeakyReLU, no BN
        h = conv2d_same_im2col(h, self.conv_in["w"], self.conv_in["b"],
                               slope=LEAKY_SLOPE)
        for p in self.blocks:
            h = resnet2d(h, p)
        h = self._apply_conv_out(h)
        return jnp.transpose(h, (0, 3, 1, 2))                  # back to NCHW


if __name__ == "__main__":
    key = jax.random.PRNGKey(0)
    k_param, k_data = jax.random.split(key)
    # Small, consistent config: n_fft=128 -> 65 freq bins (halved 6x inside),
    # hop=32, n_channels=4, audio length 256.
    n_fft, hop, nc = 128, 32, 4
    B, L = 2, 256
    model = STFTDiscriminator(k_param, n_fft=n_fft, hop_length=hop,
                              n_channels=nc)
    x = jax.random.normal(k_data, (B, 1, L), jnp.float32)
    out = jax.block_until_ready(model(x))
    assert out.shape[0] == B and out.shape[1] == 1 and out.shape[2] == 1
    assert bool(jnp.all(jnp.isfinite(out)))
    print("KERNEL_OK")
</pallas_src>

<mosaic_0001>
module attributes {stable_mosaic.version = 11 : i64} {
  func.func @_stft_kernel(%arg0: i32, %arg1: memref<18x128xf32, #tpu.memory_space<vmem>>, %arg2: memref<128x256xf32, #tpu.memory_space<vmem>>, %arg3: memref<18x128xbf16, #tpu.memory_space<vmem>>) attributes {dimension_semantics = [#tpu.dimension_semantics<parallel>], iteration_bounds = array<i64: 1>, scalar_prefetch = 0 : i64, scratch_operands = 0 : i64, tpu.core_type = #tpu.core_type<tc>, window_params = [{transform_indices = @transform_0, window_bounds = array<i64: 18, 128>}, {pipeline_mode = #tpu.pipeline_mode<synchronous>, transform_indices = @transform_1, window_bounds = array<i64: 128, 256>}, {transform_indices = @transform_2, window_bounds = array<i64: 18, 128>}]} {
    %c0 = arith.constant 0 : index
    %c0_0 = arith.constant 0 : index
    %0 = vector.load %arg1[%c0, %c0_0] : memref<18x128xf32, #tpu.memory_space<vmem>>, vector<18x128xf32>
    %c0_1 = arith.constant 0 : index
    %c0_2 = arith.constant 0 : index
    %1 = vector.load %arg2[%c0_1, %c0_2] : memref<128x256xf32, #tpu.memory_space<vmem>>, vector<128x256xf32>
    %cst = arith.constant dense<0.000000e+00> : vector<18x256xf32>
    %2 = tpu.matmul %0, %1, %cst {dimension_numbers = #tpu.dot_dimension_numbers<[1], [0], [0], [1], [0, 0, 1, 1], [], []>} : vector<18x128xf32>, vector<128x256xf32>, vector<18x256xf32> -> vector<18x256xf32>
    %3 = vector.extract_strided_slice %2 {offsets = [0, 0], sizes = [18, 128], strides = [1, 1]} : vector<18x256xf32> to vector<18x128xf32>
    %4 = vector.extract_strided_slice %2 {offsets = [0, 128], sizes = [18, 128], strides = [1, 1]} : vector<18x256xf32> to vector<18x128xf32>
    %5 = arith.mulf %3, %3 : vector<18x128xf32>
    %6 = arith.mulf %4, %4 : vector<18x128xf32>
    %7 = arith.addf %5, %6 : vector<18x128xf32>
    %8 = math.sqrt %7 : vector<18x128xf32>
    %9 = arith.truncf %8 : vector<18x128xf32> to vector<18x128xbf16>
    %c0_3 = arith.constant 0 : index
    %c0_4 = arith.constant 0 : index
    %10 = vector.load %arg3[%c0_3, %c0_4] : memref<18x128xbf16, #tpu.memory_space<vmem>>, vector<18x128xbf16>
    tpu.vector_store %arg3[%c0_3, %c0_4], %9 {strides = array<i32>} : memref<18x128xbf16, #tpu.memory_space<vmem>>, vector<18x128xbf16>,
    return
  }
  func.func @transform_0(%arg0: i32) -> (i32, i32) {
    %c0_i32 = arith.constant 0 : i32
    %c0_i32_0 = arith.constant 0 : i32
    return %arg0, %c0_i32 : i32, i32
  }
  func.func @transform_1(%arg0: i32) -> (i32, i32) {
    %c0_i32 = arith.constant 0 : i32
    %c0_i32_0 = arith.constant 0 : i32
    %c0_i32_1 = arith.constant 0 : i32
    return %c0_i32, %c0_i32_0 : i32, i32
  }
  func.func @transform_2(%arg0: i32) -> (i32, i32) {
    %c0_i32 = arith.constant 0 : i32
    %c0_i32_0 = arith.constant 0 : i32
    return %arg0, %c0_i32 : i32, i32
  }
}

</mosaic_0001>

<bundles_post_ra>
// kernel: tpu_custom_call.1
= control target key start
LH: loop header
LB: loop body
LE: loop exit
PB: predicated region body
PF: predicated region fallthrough
CT: control target
= control target key end

     0   :  { %7 = vsyncpa [#allocation3], 0  ;;  %s433_s0 = inlined_call_operand.hbm [shape: f32[18,128], index: 0, kind: input, shape index: {}]   ;;  %s434_s1 = inlined_call_operand.hbm [shape: f32[128,256], index: 1, kind: input, shape index: {}]   ;;  %s435_s2 = inlined_call_operand.hbm [shape: bf16[18,128], index: 2, kind: output, shape index: {}]  }
   0x1   :  { %8 = vsyncpa [#allocation6], 0 }
   0x2   :  { %9 = vsyncpa [#allocation4], 0  ;;  %s369_s9 = smov [#allocation2]   ;;  %s297_s13 = scalar_lea.hbm %s433_s0, 384 }
   0x3   :  { %s15_s10 = sshll.u32 %s369_s9, 4  ;;  %p298_p0 = scmp.ne.s32.totalorder %s433_s0, %s297_s13  ;;  %s16_s10 = int_to_ptr.vmem [resolvable:$true] %s15_s10 }
   0x4   :  { %p301_p1 = scmp.lt.u32.totalorder %s297_s13, %s433_s0 }
   0x6   :  { %p303_p2 = pnand %p301_p1, %p298_p0 }
   0x8   :  { %306 = shalt.err (!%p303_p2)
}
   0x9   :  { %s307_s18 = scalar_lea.vmem %s16_s10, 384  ;;  %p312_p4 = scmp.lt.s32.totalorder %s16_s10, %s16_s10 }
   0xa   :  { %p308_p3 = scmp.ne.s32.totalorder %s16_s10, %s307_s18  ;;  %p313_p5 = scmp.lt.s32.totalorder %s307_s18, %s307_s18 }
   0xc   :  { %p314_p6 = por %p313_p5, %p312_p4 }
   0xe   :  { %p315_p7 = pnand %p314_p6, %p308_p3 }
  0x10   :  { %318 = shalt.err (!%p315_p7)
}
  0x11   :  { %s370_s19 = smov 128   ;;  %s371_s20 = smov 8  }
  0x12   :  { %21 = dma.hbm_to_vmem [thread:$0]  %s433_s0, 384, %s16_s10, [#allocation3], %s370_s19, %s370_s19, %s371_s20  }
  0x13   :  { %s372_s23 = smov [#allocation5]   ;;  %s319_s27 = scalar_lea.hbm %s434_s1, 4096 }
  0x14   :  { %s27_s24 = sshll.u32 %s372_s23, 4  ;;  %p320_p8 = scmp.ne.s32.totalorder %s434_s1, %s319_s27  ;;  %s28_s24 = int_to_ptr.vmem [resolvable:$true] %s27_s24 }
  0x15   :  { %p323_p9 = scmp.lt.u32.totalorder %s319_s27, %s434_s1 }
  0x17   :  { %p325_p10 = pnand %p323_p9, %p320_p8 }
  0x19   :  { %328 = shalt.err (!%p325_p10)
}
  0x1a   :  { %s329_s4 = scalar_lea.vmem %s28_s24, 4096  ;;  %p334_p12 = scmp.lt.s32.totalorder %s28_s24, %s28_s24 }
  0x1b   :  { %p330_p11 = scmp.ne.s32.totalorder %s28_s24, %s329_s4  ;;  %p335_p13 = scmp.lt.s32.totalorder %s329_s4, %s329_s4 }
  0x1d   :  { %p336_p0 = por %p335_p13, %p334_p12 }
  0x1f   :  { %p337_p1 = pnand %p336_p0, %p330_p11 }
  0x21   :  { %340 = shalt.err (!%p337_p1)
}
  0x22   :  { %s373_s0 = smov 256   ;;  %s374_s5 = smov 16  }
  0x23   :  { %33 = dma.hbm_to_vmem [thread:$0]  %s434_s1, 4096, %s28_s24, [#allocation6], %s373_s0, %s373_s0, %s374_s5  }
  0x24   :  { %363 = dma.done.wait [#allocation3], 384  }
  0x25   :  { %364 = vsyncadd [#allocation3], 4294966912 }
  0x26   :  { %365 = dma.done.wait [#allocation6], 4096  }
  0x27   :  { %366 = vsyncadd [#allocation6], 4294963200  ;;  %v375_v0 = vmov 0.0   ;;  %v44_v1 = vld [vmem:[#allocation5 + $0x8] sm:$0xff]  ;;  %v46_v2 = vld [vmem:[#allocation5 + $0x18] sm:$0xff]  ;;  %s376_s1 = smov [#allocation7]  }
  0x28   :  { %139 = vmatprep.mubr.f32.mxu0 %v375_v0  ;;  %145 = vmatprep.mubr.f32.mxu1 %v375_v0  ;;  %v43_v3 = vld [vmem:[#allocation5] sm:$0xff]  ;;  %v233_v4 = vpack.c.bf16 %v46_v2, %v44_v1  ;;  %v45_v5 = vld [vmem:[#allocation5 + $0x10] sm:$0xff]  ;;  %v48_v6 = vld [vmem:[#allocation5 + $0x28] sm:$0xff]  ;;  %s209_s8 = sshll.u32 %s376_s1, 4  ;;  %s210_s8 = int_to_ptr.vmem [resolvable:$true] %s209_s8 }
  0x29   :  { %v50_v7 = vld [vmem:[#allocation5 + $0x38] sm:$0xff]  ;;  %v235_v8 = vpack.c.bf16 %v45_v5, %v43_v3  ;;  %v47_v10 = vld [vmem:[#allocation5 + $0x20] sm:$0xff]  ;;  %v49_v11 = vld [vmem:[#allocation5 + $0x30] sm:$0xff]  ;;  %s341_s9 = scalar_lea.vmem %s210_s8, 192  ;;  %p346_p3 = scmp.lt.s32.totalorder %s210_s8, %s210_s8 }
  0x2a   :  { %v237_v9 = vpack.c.bf16 %v50_v7, %v48_v6  ;;  %v52_v12 = vld [vmem:[#allocation5 + $0x48] sm:$0xff]  ;;  %234 = vmatprep.subr.bf16.mxu0 %v233_v4  ;;  %265 = vmatprep.subr.bf16.mxu1 %v233_v4  ;;  %v54_v13 = vld [vmem:[#allocation5 + $0x58] sm:$0xff]  ;;  %v239_v14 = vpack.c.bf16 %v49_v11, %v47_v10  ;;  %v51_v16 = vld [vmem:[#allocation5 + $0x40] sm:$0xff]  ;;  %p342_p2 = scmp.ne.s32.totalorder %s210_s8, %s341_s9  ;;  %p347_p4 = scmp.lt.s32.totalorder %s341_s9, %s341_s9 }
  0x2b   :  { %236 = vmatpush1.bf16.msra.mxu0 %v235_v8  ;;  %273 = vmatpush1.bf16.msra.mxu1 %v235_v8  ;;  %v241_v15 = vpack.c.bf16 %v54_v13, %v52_v12  ;;  %v53_v17 = vld [vmem:[#allocation5 + $0x50] sm:$0xff]  ;;  %v56_v18 = vld [vmem:[#allocation5 + $0x68] sm:$0xff]  ;;  %v58_v19 = vld [vmem:[#allocation5 + $0x78] sm:$0xff] }
  0x2c   :  { %238 = vmatprep.subr.bf16.mxu0 %v237_v9  ;;  %266 = vmatprep.subr.bf16.mxu1 %v237_v9  ;;  %v243_v20 = vpack.c.bf16 %v53_v17, %v51_v16  ;;  %v245_v21 = vpack.c.bf16 %v58_v19, %v56_v18  ;;  %v55_v22 = vld [vmem:[#allocation5 + $0x60] sm:$0xff]  ;;  %v57_v23 = vld [vmem:[#allocation5 + $0x70] sm:$0xff]  ;;  %v60_v24 = vld [vmem:[#allocation5 + $0x88] sm:$0xff]  ;;  %p348_p5 = por %p347_p4, %p346_p3 }
  0x2d   :  { %v62_v25 = vld [vmem:[#allocation5 + $0x98] sm:$0xff]  ;;  %v247_v26 = vpack.c.bf16 %v57_v23, %v55_v22  ;;  %v59_v28 = vld [vmem:[#allocation5 + $0x80] sm:$0xff]  ;;  %v61_v29 = vld [vmem:[#allocation5 + $0x90] sm:$0xff] }
  0x2e   :  { %v249_v27 = vpack.c.bf16 %v62_v25, %v60_v24  ;;  %v64_v30 = vld [vmem:[#allocation5 + $0xa8] sm:$0xff]  ;;  %v66_v31 = vld [vmem:[#allocation5 + $0xb8] sm:$0xff]  ;;  %v251_v32 = vpack.c.bf16 %v61_v29, %v59_v28  ;;  %v63_v34 = vld [vmem:[#allocation5 + $0xa0] sm:$0xff]  ;;  %p349_p6 = pnand %p348_p5, %p342_p2 }
  0x2f   :  { %240 = vmatpush1.bf16.msra.mxu0 %v239_v14  ;;  %274 = vmatpush1.bf16.msra.mxu1 %v239_v14  ;;  %v253_v33 = vpack.c.bf16 %v66_v31, %v64_v30  ;;  %v65_v35 = vld [vmem:[#allocation5 + $0xb0] sm:$0xff]  ;;  %v68_v36 = vld [vmem:[#allocation5 + $0xc8] sm:$0xff]  ;;  %v70_v37 = vld [vmem:[#allocation5 + $0xd8] sm:$0xff] }
  0x30   :  { %242 = vmatprep.subr.bf16.mxu0 %v241_v15  ;;  %267 = vmatprep.subr.bf16.mxu1 %v241_v15  ;;  %v255_v38 = vpack.c.bf16 %v65_v35, %v63_v34  ;;  %v257_v39 = vpack.c.bf16 %v70_v37, %v68_v36  ;;  %v67_v40 = vld [vmem:[#allocation5 + $0xc0] sm:$0xff]  ;;  %v69_v41 = vld [vmem:[#allocation5 + $0xd0] sm:$0xff]  ;;  %v72_v42 = vld [vmem:[#allocation5 + $0xe8] sm:$0xff] }
  0x31   :  { %v74_v43 = vld [vmem:[#allocation5 + $0xf8] sm:$0xff]  ;;  %v259_v44 = vpack.c.bf16 %v69_v41, %v67_v40  ;;  %v71_v46 = vld [vmem:[#allocation5 + $0xe0] sm:$0xff]  ;;  %v73_v47 = vld [vmem:[#allocation5 + $0xf0] sm:$0xff] }
  0x32   :  { %v261_v45 = vpack.c.bf16 %v74_v43, %v72_v42  ;;  %v263_v48 = vpack.c.bf16 %v73_v47, %v71_v46  ;;  %v40_v49 = vld [vmem:[#allocation2] sm:$0xff]  ;;  %v41_v50 = vld [vmem:[#allocation2 + $0x8] sm:$0xff]  ;;  %v42_v51 = vld [vmem:[#allocation2 + $0x10] sm:$0x3] }
  0x33   :  { %244 = vmatpush1.bf16.msra.mxu0 %v243_v20  ;;  %275 = vmatpush1.bf16.msra.mxu1 %v243_v20 }
  0x34   :  { %246 = vmatprep.subr.bf16.mxu0 %v245_v21  ;;  %268 = vmatprep.subr.bf16.mxu1 %v245_v21 }
  0x37   :  { %248 = vmatpush1.bf16.msra.mxu0 %v247_v26  ;;  %276 = vmatpush1.bf16.msra.mxu1 %v247_v26 }
  0x38   :  { %250 = vmatprep.subr.bf16.mxu0 %v249_v27  ;;  %269 = vmatprep.subr.bf16.mxu1 %v249_v27 }
  0x3b   :  { %252 = vmatpush1.bf16.msra.mxu0 %v251_v32  ;;  %277 = vmatpush1.bf16.msra.mxu1 %v251_v32 }
  0x3c   :  { %254 = vmatprep.subr.bf16.mxu0 %v253_v33  ;;  %270 = vmatprep.subr.bf16.mxu1 %v253_v33 }
  0x3f   :  { %256 = vmatpush1.bf16.msra.mxu0 %v255_v38  ;;  %278 = vmatpush1.bf16.msra.mxu1 %v255_v38 }
  0x40   :  { %258 = vmatprep.subr.bf16.mxu0 %v257_v39  ;;  %271 = vmatprep.subr.bf16.mxu1 %v257_v39 }
  0x43   :  { %260 = vmatpush1.bf16.msra.mxu0 %v259_v44  ;;  %279 = vmatpush1.bf16.msra.mxu1 %v259_v44 }
  0x44   :  { %262 = vmatprep.subr.bf16.mxu0 %v261_v45  ;;  %272 = vmatprep.subr.bf16.mxu1 %v261_v45 }
  0x47   :  { %264 = vmatpush1.bf16.msra.mxu0 %v263_v48  ;;  %280 = vmatpush1.bf16.msra.mxu1 %v263_v48 }
  0x4a   :  { %140 = vmatmul.mubr.f32.vlgmr.msra.gmra.mrb[0].mxu0 %v40_v49  ;;  %146 = vmatmul.mubr.f32.vlgmr.msra.gmra.mrb[0].mxu1 %v41_v50 }
  0x4b   :  { %151 = vmatprep.mubr.f32.mxu1 %v375_v0 }
  0x4e   :  { %152 = vmatmul.mubr.f32.gmra.mrb[2].mxu1 %v42_v51 }
 0x11d   :  { %v141_v52 = vpop.f32.mrb[0].mxu0  ;;  %v147_v53 = vpop.f32.mrb[0].mxu1 }
 0x11e   :  { %v158_v54 = vmul.f32 %v141_v52, %v141_v52  ;;  %v159_v55 = vmul.f32 %v147_v53, %v147_v53  ;;  %v143_v56 = vpop.f32.mrb[1].mxu0  ;;  %v149_v57 = vpop.f32.mrb[1].mxu1 }
 0x11f   :  { %v161_v58 = vmul.f32 %v143_v56, %v143_v56  ;;  %v162_v59 = vmul.f32 %v149_v57, %v149_v57 }
 0x121   :  { %v164_v60 = vadd.f32 %v161_v58, %v158_v54  ;;  %v165_v61 = vadd.f32 %v162_v59, %v159_v55  ;;  %v153_v62 = vpop.f32.mrb[2].mxu1 }
 0x122   :  { %v160_v63 = vmul.f32 %v153_v62, %v153_v62  ;;  %v155_v1 = vpop.f32.mrb[3].mxu1 }
 0x123   :  { %291 = vrsqrt.f32 %v164_v60  ;;  %v163_v2 = vmul.f32 %v155_v1, %v155_v1  ;;  %vm169_vm0 = vcmp.eq.f32.partialorder %v164_v60, inf  ;;  %v172_v6 = vand.u32 2147483648, %v164_v60 }
 0x124   :  { %293 = vrsqrt.f32 %v165_v61  ;;  %vm171_vm1 = vcmp.eq.f32.partialorder %v164_v60, 0.0  ;;  %vm176_vm2 = vcmp.eq.f32.partialorder %v165_v61, inf  ;;  %v179_v9 = vand.u32 2147483648, %v165_v61 }
 0x125   :  { %v166_v3 = vadd.f32 %v163_v2, %v160_v63  ;;  %vm178_vm3 = vcmp.eq.f32.partialorder %v165_v61, 0.0 }
 0x127   :  { %295 = vrsqrt.f32 %v166_v3  ;;  %vm183_vm4 = vcmp.eq.f32.partialorder %v166_v3, inf  ;;  %v186_v15 = vand.u32 2147483648, %v166_v3  ;;  %vm185_vm5 = vcmp.eq.f32.partialorder %v166_v3, 0.0 }
 0x12d   :  { %v292_v0 = vpop.eup %291 }
 0x12e   :  { %v294_v4 = vpop.eup %293  ;;  %v168_v5 = vmul.f32 %v292_v0, %v164_v60 }
 0x12f   :  { %v175_v7 = vmul.f32 %v294_v4, %v165_v61 }
 0x130   :  { %v170_v8 = vsel %vm169_vm0, %v164_v60, %v168_v5 }
 0x131   :  { %v296_v10 = vpop.eup %295  ;;  %v173_v11 = vsel %vm171_vm1, %v172_v6, %v170_v8  ;;  %v177_v12 = vsel %vm176_vm2, %v165_v61, %v175_v7 }
 0x132   :  { %v180_v13 = vsel %vm178_vm3, %v179_v9, %v177_v12  ;;  %v182_v14 = vmul.f32 %v296_v10, %v166_v3 }
 0x133   :  { %v231_v16 = vpack.c.bf16 %v180_v13, %v173_v11 }
 0x134   :  { %v184_v17 = vsel %vm183_vm4, %v166_v3, %v182_v14 }
 0x135   :  { %v187_v18 = vsel %vm185_vm5, %v186_v15, %v184_v17  ;;  %232 = vst [vmem:[#allocation7] sm:$0xff] %v231_v16  }
 0x136   :  { %v227_v19 = vpack.c.bf16 %v187_v18, %v187_v18 }
 0x138   :  { %203 = vst [vmem:[#allocation7 + $0x8] sm:$0x1] %v227_v19 }
 0x139   :  { %352 = shalt.err (!%p349_p6)
}
 0x13a   :  { %s353_s12 = scalar_lea.hbm %s435_s2, 192 }
 0x13b   :  { %p354_p7 = scmp.ne.s32.totalorder %s435_s2, %s353_s12  ;;  %p357_p8 = scmp.lt.u32.totalorder %s353_s12, %s435_s2 }
 0x13d   :  { %p359_p9 = pnand %p357_p8, %p354_p7 }
 0x13f   :  { %362 = shalt.err (!%p359_p9)
}
 0x140   :  { %s377_s17 = smov 64   ;;  %s378_s18 = smov 4  }
 0x141   :  { %215 = dma.vmem_to_hbm [thread:$0]  %s210_s8, 192, %s435_s2, [#allocation4], %s377_s17, %s377_s17, %s378_s18  }
 0x142   :  { %367 = dma.done.wait [#allocation4], 192  }
 0x143   :  { %368 = vsyncadd [#allocation4], 4294967104 }
 0x144   :  { %219 = vsyncpa [#allocation3], 1 }
 0x145   :  { %220 = vsyncpa [#allocation6], 1 }
 0x146   :  { %221 = vsyncpa [#allocation4], 1 }

</bundles_post_ra>
